<compile_context>
chip_gen: v7x
topology: tpu7x:2x2x1
jax: 0.10.0
libtpu: 0.0.40
codegen_flags: <defaults>
</compile_context>

<pallas_src>
import functools

import jax
import jax.numpy as jnp
from jax.experimental import pallas as pl
from jax.experimental.pallas import tpu as pltpu


# ----------------------------------------------------------------------------
# Gate kernel: fc1(1x1)+bn(+folded)+relu -> fc2(1x1) -> hard GumbleSoftmax.
# This is the GumbleSoftmax forward (eval / force_hard): one_hot(argmax(logits + gumbel)).
# Emits both the one-hot (module output) and the int32 gate for scalar prefetch.
# ----------------------------------------------------------------------------
def _gate_kernel(pooled_ref, fc1w_ref, fc1b_ref, fc2w_ref, fc2b_ref, gn_ref,
                 y_ref, gate_ref):
    g = jnp.dot(pooled_ref[...], fc1w_ref[...],
                preferred_element_type=jnp.float32) + fc1b_ref[...]            # (N, 16)
    g = jnp.maximum(g, 0.0)
    z = jnp.dot(g, fc2w_ref[...],
                preferred_element_type=jnp.float32) + fc2b_ref[...] + gn_ref[...]  # (N, 2)
    # hard gumbel-softmax: class 1 wins only on strict inequality (torch argmax tie -> index 0)
    win = (z[:, 1:2] > z[:, 0:1]).astype(jnp.int32)                            # (N, 1)
    cls = jax.lax.broadcasted_iota(jnp.int32, z.shape, 1)                      # (N, 2)
    y_ref[...] = (cls == win).astype(jnp.float32)                              # one-hot
    gate_ref[...] = win                                                        # int gate, no XLA glue


# ----------------------------------------------------------------------------
# Fused main kernel (one batch image per grid step).
# gate on : conv1+relu -> pad (bf16 VMEM, halo-only zero) -> im2col 3x3 conv2+relu
#           -> fused [conv3 | shortcut] matmul + merged bias -> relu -> store
# gate off: shortcut matmul + bias -> relu -> store            (everything else skipped)
# ----------------------------------------------------------------------------
def _block_kernel(gate_ref,                                        # scalar prefetch (SMEM)
                  x_ref, w1_ref, b1_ref,
                  w2_ref, b2_ref,
                  w3sc_ref, bres_ref,
                  wsc_ref, bsc_ref,
                  out_ref, p1_ref, *, H, W, Cin, P, Pexp, pack_w):
    b = pl.program_id(0)
    HW = H * W
    x2 = x_ref[...].reshape(HW, Cin)                               # bf16 (HW, Cin)

    def store(out_f32):
        o = out_f32.astype(out_ref.dtype)                          # bf16 writeback (review #9)
        if pack_w:                                                 # lane-dense pack only if 4P<128
            out_ref[...] = o.reshape(H, W * Pexp)
        else:
            out_ref[...] = o

    @pl.when(gate_ref[b, 0] > 0)
    def _gate_on():
        # conv1 (1x1) + folded bn1 + relu  (scale already folded into w1)
        h1 = jnp.dot(x2, w1_ref[...], preferred_element_type=jnp.float32) + b1_ref[...]
        h1 = jnp.maximum(h1, 0.0).astype(jnp.bfloat16)             # bf16 before the padded store

        # zero ONLY the 1-pixel halo; interior is fully overwritten right below.
        zrow = jnp.zeros((1, W + 2, P), jnp.bfloat16)
        zcol = jnp.zeros((H + 2, 1, P), jnp.bfloat16)
        p1_ref[0:1, :, :] = zrow
        p1_ref[H + 1:H + 2, :, :] = zrow
        p1_ref[:, 0:1, :] = zcol
        p1_ref[:, W + 1:W + 2, :] = zcol
        p1_ref[1:H + 1, 1:W + 1, :] = h1.reshape(H, W, P)

        # conv2 (3x3, pad=1, stride=1): single K=9P im2col matmul (bf16 patches).
        patches = jnp.concatenate(
            [p1_ref[dy:dy + H, dx:dx + W, :] for dy in range(3) for dx in range(3)],
            axis=-1).reshape(HW, 9 * P)                            # bf16 (HW, 9P)
        h2 = jnp.dot(patches, w2_ref[...],
                     preferred_element_type=jnp.float32) + b2_ref[...]
        h2 = jnp.maximum(h2, 0.0).astype(jnp.bfloat16)             # (HW, P)

        # fused conv3 + shortcut: one K=(P+Cin) matmul, merged residual bias, relu.
        lhs = jnp.concatenate([h2, x2], axis=-1)                   # (HW, P+Cin) bf16
        out = jnp.dot(lhs, w3sc_ref[...],
                      preferred_element_type=jnp.float32) + bres_ref[...]
        store(jnp.maximum(out, 0.0))

    @pl.when(gate_ref[b, 0] == 0)
    def _gate_off():
        sc = jnp.dot(x2, wsc_ref[...],
                     preferred_element_type=jnp.float32) + bsc_ref[...]
        store(jnp.maximum(sc, 0.0))


# ----------------------------------------------------------------------------
# Wrapper
# ----------------------------------------------------------------------------
def bottleneck_forward(x_nchw, params, gumbel_noise):
    """x_nchw: (N, Cin, H, W) f32. Returns (out NCHW bf16, gumbel one-hot (N, 2) f32)."""
    N, Cin, H, W = x_nchw.shape
    P = params["planes"]
    Pexp = 4 * P
    x_nhwc = jnp.transpose(x_nchw, (0, 2, 3, 1)).astype(jnp.float32)           # NHWC

    # --- gate path (O(N*16)): pool in XLA, fc + hard GumbleSoftmax in one Pallas call ---
    pooled = jnp.mean(x_nhwc, axis=(1, 2))                                     # (N, Cin)
    y_onehot, gate_i32 = pl.pallas_call(
        _gate_kernel,
        out_shape=(jax.ShapeDtypeStruct((N, 2), jnp.float32),
                   jax.ShapeDtypeStruct((N, 1), jnp.int32)),
    )(pooled, params["fc1w"], params["fc1b"], params["fc2w"], params["fc2b"],
      gumbel_noise)

    # --- fused main path: grid over batch, bf16 matmul inputs, bf16 output ---
    x_flat = x_nhwc.reshape(N, H * W, Cin).astype(jnp.bfloat16)
    const = lambda b, g: (0, 0)     # weights / bias vectors stay VMEM-resident

    pack_w = (Pexp % 128 != 0)
    if pack_w:
        # small-channel config: pack W into lanes so the store is lane-dense
        assert (W * Pexp) % 128 == 0 and H % 8 == 0, "demo config must be lane/sublane aligned"
        out_shape = jax.ShapeDtypeStruct((N * H, W * Pexp), jnp.bfloat16)
        out_spec = pl.BlockSpec((H, W * Pexp), lambda b, g: (b, 0))
    else:
        # 4P already a multiple of 128: store (HW, 4P) directly (review #8)
        out_shape = jax.ShapeDtypeStruct((N * H * W, Pexp), jnp.bfloat16)
        out_spec = pl.BlockSpec((H * W, Pexp), lambda b, g: (b, 0))

    grid_spec = pltpu.PrefetchScalarGridSpec(
        num_scalar_prefetch=1,                                                 # gate -> SMEM
        grid=(N,),
        in_specs=[
            pl.BlockSpec((1, H * W, Cin), lambda b, g: (b, 0, 0)),             # x
            pl.BlockSpec((Cin, P), const),        # w1 (bn1 scale folded)
            pl.BlockSpec((1, P), const),          # b1
            pl.BlockSpec((9 * P, P), const),      # w2 (im2col-concatenated, bn2 scale folded)
            pl.BlockSpec((1, P), const),          # b2
            pl.BlockSpec((P + Cin, Pexp), const), # [w3 ; wsc] fused (bn scales folded)
            pl.BlockSpec((1, Pexp), const),       # merged residual bias b3+bsc
            pl.BlockSpec((Cin, Pexp), const),     # wsc alone (gate-off branch)
            pl.BlockSpec((1, Pexp), const),       # bsc
        ],
        out_specs=out_spec,
        scratch_shapes=[pltpu.VMEM((H + 2, W + 2, P), jnp.bfloat16)],          # padded conv1 out
    )

    out_flat = pl.pallas_call(
        functools.partial(_block_kernel, H=H, W=W, Cin=Cin, P=P, Pexp=Pexp, pack_w=pack_w),
        grid_spec=grid_spec,
        out_shape=out_shape,
        compiler_params=pltpu.CompilerParams(
            dimension_semantics=("parallel",),            # shard batch across TCs (v7x)
            vmem_limit_bytes=32 * 1024 * 1024),           # well under v7x 64 MiB VMEM
    )(gate_i32, x_flat,
      params["w1"], params["b1"],
      params["w2"], params["b2"],
      params["w3sc"], params["bres"],
      params["wsc"], params["bsc"])

    out_nhwc = out_flat.reshape(N, H, W, Pexp)
    out_nchw = jnp.transpose(out_nhwc, (0, 3, 1, 2))
    return out_nchw, y_onehot


# ----------------------------------------------------------------------------
# Deterministic parameter construction (glue) with BN scales folded into weights
# ----------------------------------------------------------------------------
def _bn_fold(key, c, eps=1e-5):
    k1, k2, k3, k4 = jax.random.split(key, 4)
    gamma = 1.0 + 0.1 * jax.random.normal(k1, (c,), jnp.float32)
    beta = 0.1 * jax.random.normal(k2, (c,), jnp.float32)
    mean = 0.1 * jax.random.normal(k3, (c,), jnp.float32)
    var = 1.0 + 0.1 * jnp.abs(jax.random.normal(k4, (c,), jnp.float32))
    scale = gamma / jnp.sqrt(var + eps)
    bias = beta - mean * scale
    return scale, bias                                                         # (c,), (c,)


def make_params(key, in_planes, planes):
    pexp = 4 * planes
    ks = jax.random.split(key, 12)

    # conv weights generated in PyTorch OIHW layout, then reshaped to matmul layout.
    w1_t = 0.1 * jax.random.normal(ks[0], (planes, in_planes, 1, 1), jnp.float32)
    w2_t = 0.1 * jax.random.normal(ks[1], (planes, planes, 3, 3), jnp.float32)
    w3_t = 0.1 * jax.random.normal(ks[2], (pexp, planes, 1, 1), jnp.float32)
    wsc_t = 0.1 * jax.random.normal(ks[3], (pexp, in_planes, 1, 1), jnp.float32)
    fc1w_t = 0.1 * jax.random.normal(ks[4], (16, in_planes, 1, 1), jnp.float32)
    fc1b = 0.1 * jax.random.normal(ks[5], (16,), jnp.float32)
    fc2w_t = 0.1 * jax.random.normal(ks[6], (2, 16, 1, 1), jnp.float32)
    fc2b = jnp.array([0.1, 2.0], jnp.float32)       # as in the module __init__

    s1, b1 = _bn_fold(ks[7], planes)
    s2, b2 = _bn_fold(ks[8], planes)
    s3, b3 = _bn_fold(ks[9], pexp)
    ssc, bsc = _bn_fold(ks[10], pexp)
    fbs, fbb = _bn_fold(ks[11], 16)                 # fc1bn

    # matmul-layout weights with BN scales folded per output column (review #2)
    w1 = w1_t.reshape(planes, in_planes).T * s1[None, :]                       # (Cin, P)
    w2 = jnp.transpose(w2_t, (2, 3, 1, 0)).reshape(9 * planes, planes) * s2[None, :]  # (9P, P)
    w3 = w3_t.reshape(pexp, planes).T * s3[None, :]                            # (P, 4P)
    wsc = wsc_t.reshape(pexp, in_planes).T * ssc[None, :]                      # (Cin, 4P)
    w3sc = jnp.concatenate([w3, wsc], axis=0)                                  # (P+Cin, 4P)

    # gate fc1 + fc1bn folded
    fc1w = fc1w_t.reshape(16, in_planes).T * fbs[None, :]                      # (Cin, 16)
    fc1bias = fc1b * fbs + fbb                                                 # (16,)

    return {
        "planes": planes,
        # bf16 matmul weights (MXU), f32 bias epilogues
        "w1": w1.astype(jnp.bfloat16), "b1": b1.reshape(1, planes),
        "w2": w2.astype(jnp.bfloat16), "b2": b2.reshape(1, planes),
        "w3sc": w3sc.astype(jnp.bfloat16), "bres": (b3 + bsc).reshape(1, pexp),
        "wsc": wsc.astype(jnp.bfloat16), "bsc": bsc.reshape(1, pexp),
        "fc1w": fc1w, "fc1b": fc1bias.reshape(1, 16),
        "fc2w": fc2w_t.reshape(2, 16).T, "fc2b": fc2b.reshape(1, 2),
    }


if __name__ == "__main__":
    key = jax.random.PRNGKey(0)
    k_x, k_p, k_g = jax.random.split(key, 3)

    # small config: in_planes=16, planes=8 (expansion*planes=32), stride=1
    N, Cin, H, W = 4, 16, 16, 16
    planes = 8

    x = jax.random.normal(k_x, (N, Cin, H, W), jnp.float32)   # NCHW like PyTorch
    params = make_params(k_p, Cin, planes)

    # Gumbel noise, same formula as GumbleSoftmax.sample_gumbel_like
    eps = 1e-10
    u = jax.random.uniform(k_g, (N, 2), jnp.float32)
    gumbel_noise = -jnp.log(eps - jnp.log(u + eps))

    out, y_onehot = bottleneck_forward(x, params, gumbel_noise)
    jax.block_until_ready(out)
    jax.block_until_ready(y_onehot)

    assert out.shape == (N, 4 * planes, H, W)
    assert y_onehot.shape == (N, 2)
    print("KERNEL_OK")
</pallas_src>

<mosaic_0001>
module attributes {stable_mosaic.version = 11 : i64} {
  func.func @_gate_kernel(%arg0: memref<4x16xf32, #tpu.memory_space<vmem>>, %arg1: memref<16x16xf32, #tpu.memory_space<vmem>>, %arg2: memref<1x16xf32, #tpu.memory_space<vmem>>, %arg3: memref<16x2xf32, #tpu.memory_space<vmem>>, %arg4: memref<1x2xf32, #tpu.memory_space<vmem>>, %arg5: memref<4x2xf32, #tpu.memory_space<vmem>>, %arg6: memref<4x2xf32, #tpu.memory_space<vmem>>, %arg7: memref<4x1xi32, #tpu.memory_space<vmem>>) attributes {dimension_semantics = [], scalar_prefetch = 0 : i64, scratch_operands = 0 : i64, tpu.core_type = #tpu.core_type<tc>} {
    %c0 = arith.constant 0 : index
    %c0_0 = arith.constant 0 : index
    %0 = vector.load %arg0[%c0, %c0_0] : memref<4x16xf32, #tpu.memory_space<vmem>>, vector<4x16xf32>
    %c0_1 = arith.constant 0 : index
    %c0_2 = arith.constant 0 : index
    %1 = vector.load %arg1[%c0_1, %c0_2] : memref<16x16xf32, #tpu.memory_space<vmem>>, vector<16x16xf32>
    %cst = arith.constant dense<0.000000e+00> : vector<4x16xf32>
    %2 = tpu.matmul %0, %1, %cst {dimension_numbers = #tpu.dot_dimension_numbers<[1], [0], [0], [1], [0, 0, 1, 1], [], []>} : vector<4x16xf32>, vector<16x16xf32>, vector<4x16xf32> -> vector<4x16xf32>
    %c0_3 = arith.constant 0 : index
    %c0_4 = arith.constant 0 : index
    %3 = vector.load %arg2[%c0_3, %c0_4] : memref<1x16xf32, #tpu.memory_space<vmem>>, vector<1x16xf32>
    %4 = vector.broadcast %3 : vector<1x16xf32> to vector<4x16xf32>
    %5 = arith.addf %2, %4 : vector<4x16xf32>
    %cst_5 = arith.constant 0.000000e+00 : f32
    %6 = vector.broadcast %cst_5 : f32 to vector<4x16xf32>
    %7 = arith.maximumf %5, %6 : vector<4x16xf32>
    %c0_6 = arith.constant 0 : index
    %c0_7 = arith.constant 0 : index
    %8 = vector.load %arg3[%c0_6, %c0_7] : memref<16x2xf32, #tpu.memory_space<vmem>>, vector<16x2xf32>
    %cst_8 = arith.constant dense<0.000000e+00> : vector<4x2xf32>
    %9 = tpu.matmul %7, %8, %cst_8 {dimension_numbers = #tpu.dot_dimension_numbers<[1], [0], [0], [1], [0, 0, 1, 1], [], []>} : vector<4x16xf32>, vector<16x2xf32>, vector<4x2xf32> -> vector<4x2xf32>
    %c0_9 = arith.constant 0 : index
    %c0_10 = arith.constant 0 : index
    %10 = vector.load %arg4[%c0_9, %c0_10] : memref<1x2xf32, #tpu.memory_space<vmem>>, vector<1x2xf32>
    %11 = vector.broadcast %10 : vector<1x2xf32> to vector<4x2xf32>
    %12 = arith.addf %9, %11 : vector<4x2xf32>
    %c0_11 = arith.constant 0 : index
    %c0_12 = arith.constant 0 : index
    %13 = vector.load %arg5[%c0_11, %c0_12] : memref<4x2xf32, #tpu.memory_space<vmem>>, vector<4x2xf32>
    %14 = arith.addf %12, %13 : vector<4x2xf32>
    %15 = vector.extract_strided_slice %14 {offsets = [0, 1], sizes = [4, 1], strides = [1, 1]} : vector<4x2xf32> to vector<4x1xf32>
    %16 = vector.extract_strided_slice %14 {offsets = [0, 0], sizes = [4, 1], strides = [1, 1]} : vector<4x2xf32> to vector<4x1xf32>
    %17 = arith.cmpf ogt, %15, %16 : vector<4x1xf32>
    %18 = arith.extui %17 : vector<4x1xi1> to vector<4x1xi32>
    %19 = tpu.iota {dimensions = array<i32: 1>} : vector<4x2xi32>
    %20 = vector.broadcast %18 : vector<4x1xi32> to vector<4x2xi32>
    %21 = arith.cmpi eq, %19, %20 : vector<4x2xi32>
    %22 = arith.extui %21 : vector<4x2xi1> to vector<4x2xi32>
    %23 = arith.sitofp %22 : vector<4x2xi32> to vector<4x2xf32>
    %c0_13 = arith.constant 0 : index
    %c0_14 = arith.constant 0 : index
    %24 = vector.load %arg6[%c0_13, %c0_14] : memref<4x2xf32, #tpu.memory_space<vmem>>, vector<4x2xf32>
    tpu.vector_store %arg6[%c0_13, %c0_14], %23 {strides = array<i32>} : memref<4x2xf32, #tpu.memory_space<vmem>>, vector<4x2xf32>,
    %c0_15 = arith.constant 0 : index
    %c0_16 = arith.constant 0 : index
    %25 = vector.load %arg7[%c0_15, %c0_16] : memref<4x1xi32, #tpu.memory_space<vmem>>, vector<4x1xi32>
    tpu.vector_store %arg7[%c0_15, %c0_16], %18 {strides = array<i32>} : memref<4x1xi32, #tpu.memory_space<vmem>>, vector<4x1xi32>,
    return
  }
}

</mosaic_0001>

<bundles_post_ra>
// kernel: tpu_custom_call.1
= control target key start
LH: loop header
LB: loop body
LE: loop exit
PB: predicated region body
PF: predicated region fallthrough
CT: control target
= control target key end

     0   :  { %v261_v0 = vmov 0.0|0.0   ;;  %vm262_vm0 = vmmov 0   ;;  %v263_v3 = vmov 0.0   ;;  %vm35_vm1 = vcmask 130048   ;;  %s267_s14 = smov 127   ;;  %s338_s1 = inlined_call_operand.vmem [shape: f32[16,16], index: 1, kind: input, shape index: {}]   ;;  %s339_s0 = inlined_call_operand.vmem [shape: f32[4,16], index: 0, kind: input, shape index: {}]   ;;  %s340_s3 = inlined_call_operand.vmem [shape: f32[16,2], index: 3, kind: input, shape index: {}]   ;;  %s341_s2 = inlined_call_operand.vmem [shape: f32[1,16], index: 2, kind: input, shape index: {}]   ;;  %s342_s4 = inlined_call_operand.vmem [shape: f32[1,2], index: 4, kind: input, shape index: {}]   ;;  %s343_s5 = inlined_call_operand.vmem [shape: f32[4,2], index: 5, kind: input, shape index: {}]   ;;  %s344_s7 = inlined_call_operand.vmem [shape: s32[4,1], index: 7, kind: output, shape index: {1}]   ;;  %s345_s6 = inlined_call_operand.vmem [shape: f32[4,2], index: 6, kind: output, shape index: {0}]  }
   0x1   :  { %247 = vmatprep.subr.bf16.mxu0 %v261_v0  ;;  %v26_v1 = vld [vmem:[%s338_s1] sm:$0xff]  ;;  %v27_v2 = vld [vmem:[%s338_s1 + $0x8] sm:$0xff]  ;;  %237 = vmatprep.mubr.msk.f32.mxu0 %vm262_vm0, %v263_v3  ;;  %v264_v14 = vmov 1   ;;  %v266_v22 = vmov 0   ;;  %vm212_vm3 = vcmask 3072   ;;  %v200_v25 = vlaneseq }
   0x2   :  { %v248_v4 = vpack.c.bf16 %v27_v2, %v26_v1  ;;  %250 = vmatprep.subr.bf16.mxu1 %v261_v0  ;;  %244 = vmatprep.mubr.msk.f32.mxu1 %vm262_vm0, %v263_v3  ;;  %v25_v5 = vld [vmem:[%s339_s0] sm:$0xf]  ;;  %v111_v7 = vld [vmem:[%s340_s3 + $0x8] sm:$0xff]  ;;  %vm208_vm4 = vcmask 11264  }
   0x3   :  { %v110_v6 = vld [vmem:[%s340_s3] sm:$0xff]  ;;  %260 = vset.pattern.permute.xlu0 %v264_v14  ;;  %v201_v26 = vand.u32 127, %v200_v25 }
   0x4   :  { %249 = vmatpush3.bf16.msra.mxu0 %v248_v4  ;;  %v251_v8 = vpack.c.bf16 %v111_v7, %v110_v6  ;;  %v222_v9 = vld [vmem:[%s341_s2] ss:$0 sm:$0xff]  ;;  %s265_s2 = smov 1  }
   0x5   :  { %v224_v15 = vld [vmem:[%s342_s4] ss:$0 sm:$0xff] }
   0x6   :  { %252 = vmatpush3.bf16.msra.mxu1 %v251_v8  ;;  %v192_v17 = vld [vmem:[%s343_s5] sm:$0xf] }
   0x7   :  { %238 = vmatmul.mubr.msk.f32.vlgmr.msra.gmra.mrb[0].mxu0 %vm35_vm1, %v25_v5 }
  0xda   :  { %v105_v10 = vpop.f32.mrb[0].mxu0 }
  0xdb   :  { %v106_v11 = vadd.f32 %v222_v9, %v105_v10  ;;  %v239_v12 = vpop.f32.mrb[1].mxu0 }
  0xdd   :  { %v109_v13 = vmax.f32 %v106_v11, 0.0 }
  0xdf   :  { %245 = vmatmul.mubr.msk.f32.vlgmr.msra.gmra.mrb[0].mxu1 %vm35_vm1, %v109_v13 }
 0x1b2   :  { %v188_v16 = vpop.f32.mrb[0].mxu1 }
 0x1b3   :  { %v189_v18 = vadd.f32 %v224_v15, %v188_v16  ;;  %v246_v19 = vpop.f32.mrb[1].mxu1 }
 0x1b5   :  { %v193_v20 = vadd.f32 %v192_v17, %v189_v18 }
 0x1b7   :  { %195 = vrot.lane.b32.xlu0 %v193_v20, %s265_s2 }
 0x229   :  { %v196_v21 = vpop.permute.xlu0 %195 }
 0x22a   :  { %vm198_vm2 = vcmp.gt.f32.partialorder %v193_v20, %v196_v21 }
 0x22b   :  { %v199_v23 = vsel %vm198_vm2, 1, %v266_v22 }
 0x22c   :  { %210 = vrot.lane.b32.xlu1 %v199_v23, %s267_s14  ;;  %203 = vperm.xlu0 %260, %v199_v23  }
 0x29e   :  { %v211_v24 = vpop.permute.xlu1 %210 }
 0x29f   :  { %213 = vst.msk [vmem:[%s344_s7] sm:$0xf] %vm212_vm3, %v211_v24 }
 0x2ab   :  { %v204_v27 = vpop.permute.xlu0 %203 }
 0x2ac   :  { %vm205_vm5 = vcmp.eq.s32.totalorder %v201_v26, %v204_v27 }
 0x2ad   :  { %v226_v28 = vsel %vm205_vm5, 1.0, %v263_v3 }
 0x2ae   :  { %209 = vst.msk [vmem:[%s345_s6] sm:$0xf] %vm208_vm4, %v226_v28 }

</bundles_post_ra>
